<compile_context>
chip_gen: v7x
topology: tpu7x:2x2x1
jax: 0.10.0
libtpu: 0.0.40
codegen_flags: <defaults>
</compile_context>

<pallas_src>
import functools

import jax
import jax.numpy as jnp
import numpy as np
from jax.experimental import pallas as pl
from jax.experimental.pallas import tpu as pltpu


def _yolo_decode_kernel(x_ref, o_ref, *, cp5, g, stride, anchors):
    """Decode a (bb, A*(C+5), lb) tile (lb is a block of the G*G axis).

    Per channel c = row % (C+5):
      c == 0 : (sigmoid(v) + grid_x) * stride
      c == 1 : (sigmoid(v) + grid_y) * stride
      c == 2 : exp(v) * anchor_w          (anchor_w = raw anchor, stride folded)
      c == 3 : exp(v) * anchor_h
      c >= 4 : sigmoid(v)                 (objectness + class scores)
    """
    t = x_ref[...].astype(jnp.float32)            # (bb, R, lb) -> f32 compute
    r_dim, l_dim = x_ref.shape[-2], x_ref.shape[-1]

    # Index maps from iota, computed in f32 (plain VPU ops; avoids vector
    # integer div/rem).  All values are small exact integers in f32, so the
    # floor trick and equality compares are exact (flat indices << 2^24).
    row = jax.lax.broadcasted_iota(jnp.int32, (r_dim, l_dim), 0).astype(jnp.float32)
    col = jax.lax.broadcasted_iota(jnp.int32, (r_dim, l_dim), 1).astype(jnp.float32)
    # Column offset of this L-block (compile-time 0 when the L axis isn't tiled).
    col = col + (pl.program_id(1) * l_dim).astype(jnp.float32)

    a_idx = jnp.floor((row + 0.5) / cp5)          # anchor index  (row // (C+5))
    ch = row - a_idx * cp5                        # channel index (row %  (C+5))
    gy = jnp.floor((col + 0.5) / g)               # grid_y  (col // G)
    gx = col - gy * g                             # grid_x  (col %  G)

    # Per-row additive grid offset and multiplicative scale (2D, broadcast over
    # the batch-block dim).  Anchors are compile-time constants.
    add = jnp.where(ch == 0.0, gx, 0.0) + jnp.where(ch == 1.0, gy, 0.0)
    mul = jnp.where(ch < 2.0, jnp.float32(stride), jnp.float32(1.0))
    for a, (a_w, a_h) in enumerate(anchors):
        sel = a_idx == float(a)
        mul = jnp.where(sel & (ch == 2.0), jnp.float32(a_w), mul)
        mul = jnp.where(sel & (ch == 3.0), jnp.float32(a_h), mul)

    # Single exp per element on the (otherwise idle) EUP:
    #   wh rows     : e = exp(t)       -> val = e
    #   other rows  : e = exp(-t)      -> val = 1/(1+e) + grid offset
    is_wh = (ch == 2.0) | (ch == 3.0)
    e = jnp.exp(jnp.where(is_wh, t, -t))
    sig = 1.0 / (1.0 + e)
    val = jnp.where(is_wh, e, sig + add)

    # Single store per output element.
    o_ref[...] = (val * mul).astype(o_ref.dtype)


def _choose_l_block(l, row_bytes_per_col, budget_bytes):
    """Largest multiple of 128 dividing l that fits the budget; else full l."""
    if l % 128 != 0 or l * row_bytes_per_col <= budget_bytes:
        return l
    n = l // 128
    best = 128
    for d in range(1, n + 1):
        if n % d == 0 and (128 * d) * row_bytes_per_col <= budget_bytes:
            best = 128 * d
    return best


def yolo_layer_forward(x, anchors, num_classes, img_dim=416, *,
                       torch_layout=True, out_dtype=jnp.float32,
                       max_tile_bytes=2 * 1024 * 1024):
    """Inference-path YOLOLayer.forward.  Returns (output, 0.0).

    torch_layout=True  -> output shape (B, A*G*G, C+5), exactly matching torch.
    torch_layout=False -> lane-dense (B, A*(C+5), G*G); skips an extra
                          full-tensor HBM transpose pass for TPU consumers.
    out_dtype=jnp.bfloat16 halves the kernel's HBM write stream (compute stays
    f32); keep f32 when bit-level parity with the torch reference is required.
    """
    b, ch_in, g, g2 = x.shape
    assert g == g2, "square grid expected"
    num_anchors = len(anchors)
    cp5 = num_classes + 5
    assert ch_in == num_anchors * cp5, "channel dim must be A*(C+5)"
    stride = float(img_dim) / float(g)

    r = num_anchors * cp5
    l = g * g
    assert l < (1 << 24) and r < (1 << 24), "f32 iota index trick needs idx < 2^24"

    # Lane-dense layout: channels on sublanes, the G*G spatial positions on
    # lanes.  No dtype widening here — the kernel casts on load.
    x_flat = x.reshape(b, r, l)

    in_bytes = jnp.dtype(x.dtype).itemsize
    out_bytes = jnp.dtype(out_dtype).itemsize

    # Spatial (L) blocking fallback for very large heads; usually lb == l.
    lb = _choose_l_block(l, r * 4, int(max_tile_bytes))
    l_steps = l // lb

    # Largest batch block within the per-step tile budget, then capped so the
    # grid has >= 2 steps (megacore sharding + pipeline overlap on v7x).
    bb = max(1, min(b, int(max_tile_bytes) // max(1, r * lb * 4)))
    if l_steps == 1 and b >= 2:
        bb = min(bb, max(1, b // 2))
    while b % bb:
        bb -= 1

    # Scoped VMEM sized to the actual double-buffered tiles (+ headroom) so the
    # budget is explicit even on v5e's 16 MiB default.
    tile_vmem = bb * r * lb * (in_bytes + out_bytes)
    vmem_limit = int(min(100 * 1024 * 1024,
                         max(16 * 1024 * 1024, 2 * tile_vmem + (4 << 20))))

    decoded = pl.pallas_call(
        functools.partial(
            _yolo_decode_kernel,
            cp5=cp5,
            g=g,
            stride=stride,
            anchors=tuple((float(aw), float(ah)) for aw, ah in anchors),
        ),
        out_shape=jax.ShapeDtypeStruct((b, r, l), out_dtype),
        grid=(b // bb, l_steps),
        in_specs=[pl.BlockSpec((bb, r, lb), lambda i, j: (i, 0, j))],
        out_specs=pl.BlockSpec((bb, r, lb), lambda i, j: (i, 0, j)),
        compiler_params=pltpu.CompilerParams(
            dimension_semantics=("parallel", "parallel"),
            vmem_limit_bytes=vmem_limit,
        ),
    )(x_flat)

    if not torch_layout:
        return decoded, 0.0

    # Torch-exact layout (B, A*G*G, C+5): one XLA transpose outside the kernel.
    out = decoded.reshape(b, num_anchors, cp5, g, g)
    out = jnp.transpose(out, (0, 1, 3, 4, 2)).reshape(b, num_anchors * g * g, cp5)
    return out, 0.0


def yolo_layer_reference(x, anchors, num_classes, img_dim=416):
    """Pure-JAX transcription of the PyTorch forward (targets=None path)."""
    b, _, g, _ = x.shape
    a = len(anchors)
    cp5 = num_classes + 5
    stride = float(img_dim) / float(g)

    pred = jnp.transpose(
        x.astype(jnp.float32).reshape(b, a, cp5, g, g), (0, 1, 3, 4, 2))  # (B,A,G,G,C+5)
    xs = jax.nn.sigmoid(pred[..., 0])
    ys = jax.nn.sigmoid(pred[..., 1])
    w = pred[..., 2]
    h = pred[..., 3]
    conf = jax.nn.sigmoid(pred[..., 4])
    cls = jax.nn.sigmoid(pred[..., 5:])

    grid_x = jnp.arange(g, dtype=jnp.float32).reshape(1, 1, 1, g)
    grid_y = jnp.arange(g, dtype=jnp.float32).reshape(1, 1, g, 1)
    scaled = jnp.asarray(anchors, dtype=jnp.float32) / stride
    aw = scaled[:, 0].reshape(1, a, 1, 1)
    ah = scaled[:, 1].reshape(1, a, 1, 1)

    bx = xs + grid_x
    by = ys + grid_y
    bw = jnp.exp(w) * aw
    bh = jnp.exp(h) * ah
    boxes = jnp.stack([bx, by, bw, bh], axis=-1)            # (B,A,G,G,4)

    out = jnp.concatenate(
        [
            boxes.reshape(b, -1, 4) * stride,
            conf.reshape(b, -1, 1),
            cls.reshape(b, -1, num_classes),
        ],
        axis=-1,
    )
    return out


if __name__ == "__main__":
    # Small, deterministic example consistent with the module:
    #   B=2, A=3 anchors, C=4 classes -> channels = 3*(4+5) = 27, grid G=16.
    key = jax.random.PRNGKey(0)
    anchors = ((10.0, 13.0), (16.0, 30.0), (33.0, 23.0))
    num_classes = 4
    img_dim = 416
    batch, g = 2, 16
    cp5 = num_classes + 5

    x = jax.random.normal(key, (batch, len(anchors) * cp5, g, g), dtype=jnp.float32)

    fwd = jax.jit(
        functools.partial(
            yolo_layer_forward,
            anchors=anchors,
            num_classes=num_classes,
            img_dim=img_dim,
        )
    )
    out, loss = fwd(x)
    out = jax.block_until_ready(out)

    ref = yolo_layer_reference(x, anchors, num_classes, img_dim)
    np.testing.assert_allclose(np.asarray(out), np.asarray(ref), rtol=1e-4, atol=1e-4)
    assert out.shape == (batch, len(anchors) * g * g, cp5)
    assert float(loss) == 0.0

    # Lane-dense (no-transpose) path also stays numerically consistent.
    out_dense, _ = jax.jit(
        functools.partial(
            yolo_layer_forward,
            anchors=anchors,
            num_classes=num_classes,
            img_dim=img_dim,
            torch_layout=False,
        )
    )(x)
    out_dense = jax.block_until_ready(out_dense)
    ref_dense = np.transpose(
        np.asarray(ref).reshape(batch, len(anchors), g, g, cp5), (0, 1, 4, 2, 3)
    ).reshape(batch, len(anchors) * cp5, g * g)
    np.testing.assert_allclose(np.asarray(out_dense), ref_dense, rtol=1e-4, atol=1e-4)

    print("KERNEL_OK")
</pallas_src>

<mosaic_0001>
module attributes {stable_mosaic.version = 11 : i64} {
  func.func @_yolo_decode_kernel(%arg0: i32, %arg1: i32, %arg2: memref<1x27x256xf32, #tpu.memory_space<vmem>>, %arg3: memref<1x27x256xf32, #tpu.memory_space<vmem>>) attributes {dimension_semantics = [#tpu.dimension_semantics<parallel>, #tpu.dimension_semantics<parallel>], iteration_bounds = array<i64: 2, 1>, scalar_prefetch = 0 : i64, scratch_operands = 0 : i64, tpu.core_type = #tpu.core_type<tc>, window_params = [{transform_indices = @transform_0, window_bounds = array<i64: 1, 27, 256>}, {transform_indices = @transform_1, window_bounds = array<i64: 1, 27, 256>}]} {
    %c0 = arith.constant 0 : index
    %c0_0 = arith.constant 0 : index
    %c0_1 = arith.constant 0 : index
    %0 = vector.load %arg2[%c0, %c0_0, %c0_1] : memref<1x27x256xf32, #tpu.memory_space<vmem>>, vector<1x27x256xf32>
    %1 = tpu.iota {dimensions = array<i32: 0>} : vector<27x256xi32>
    %2 = arith.sitofp %1 : vector<27x256xi32> to vector<27x256xf32>
    %3 = tpu.iota {dimensions = array<i32: 1>} : vector<27x256xi32>
    %4 = arith.sitofp %3 : vector<27x256xi32> to vector<27x256xf32>
    %c256_i32 = arith.constant 256 : i32
    %5 = arith.muli %arg1, %c256_i32 : i32
    %6 = arith.sitofp %5 : i32 to f32
    %7 = vector.broadcast %6 : f32 to vector<27x256xf32>
    %8 = arith.addf %4, %7 : vector<27x256xf32>
    %cst = arith.constant 5.000000e-01 : f32
    %9 = vector.broadcast %cst : f32 to vector<27x256xf32>
    %10 = arith.addf %2, %9 : vector<27x256xf32>
    %cst_2 = arith.constant 9.000000e+00 : f32
    %11 = vector.broadcast %cst_2 : f32 to vector<27x256xf32>
    %12 = arith.divf %10, %11 : vector<27x256xf32>
    %13 = math.floor %12 : vector<27x256xf32>
    %cst_3 = arith.constant 9.000000e+00 : f32
    %14 = vector.broadcast %cst_3 : f32 to vector<27x256xf32>
    %15 = arith.mulf %13, %14 : vector<27x256xf32>
    %16 = arith.subf %2, %15 : vector<27x256xf32>
    %cst_4 = arith.constant 5.000000e-01 : f32
    %17 = vector.broadcast %cst_4 : f32 to vector<27x256xf32>
    %18 = arith.addf %8, %17 : vector<27x256xf32>
    %cst_5 = arith.constant 1.600000e+01 : f32
    %19 = vector.broadcast %cst_5 : f32 to vector<27x256xf32>
    %20 = arith.divf %18, %19 : vector<27x256xf32>
    %21 = math.floor %20 : vector<27x256xf32>
    %cst_6 = arith.constant 1.600000e+01 : f32
    %22 = vector.broadcast %cst_6 : f32 to vector<27x256xf32>
    %23 = arith.mulf %21, %22 : vector<27x256xf32>
    %24 = arith.subf %8, %23 : vector<27x256xf32>
    %cst_7 = arith.constant 0.000000e+00 : f32
    %25 = vector.broadcast %cst_7 : f32 to vector<27x256xf32>
    %26 = arith.cmpf oeq, %16, %25 : vector<27x256xf32>
    %cst_8 = arith.constant 0.000000e+00 : f32
    %27 = vector.broadcast %cst_8 : f32 to vector<27x256xf32>
    %28 = arith.select %26, %24, %27 : vector<27x256xi1>, vector<27x256xf32>
    %cst_9 = arith.constant 1.000000e+00 : f32
    %29 = vector.broadcast %cst_9 : f32 to vector<27x256xf32>
    %30 = arith.cmpf oeq, %16, %29 : vector<27x256xf32>
    %cst_10 = arith.constant 0.000000e+00 : f32
    %31 = vector.broadcast %cst_10 : f32 to vector<27x256xf32>
    %32 = arith.select %30, %21, %31 : vector<27x256xi1>, vector<27x256xf32>
    %33 = arith.addf %28, %32 : vector<27x256xf32>
    %cst_11 = arith.constant 2.000000e+00 : f32
    %34 = vector.broadcast %cst_11 : f32 to vector<27x256xf32>
    %35 = arith.cmpf olt, %16, %34 : vector<27x256xf32>
    %cst_12 = arith.constant 2.600000e+01 : f32
    %cst_13 = arith.constant 1.000000e+00 : f32
    %36 = vector.broadcast %cst_12 : f32 to vector<27x256xf32>
    %37 = vector.broadcast %cst_13 : f32 to vector<27x256xf32>
    %38 = arith.select %35, %36, %37 : vector<27x256xi1>, vector<27x256xf32>
    %cst_14 = arith.constant 0.000000e+00 : f32
    %39 = vector.broadcast %cst_14 : f32 to vector<27x256xf32>
    %40 = arith.cmpf oeq, %13, %39 : vector<27x256xf32>
    %cst_15 = arith.constant 2.000000e+00 : f32
    %41 = vector.broadcast %cst_15 : f32 to vector<27x256xf32>
    %42 = arith.cmpf oeq, %16, %41 : vector<27x256xf32>
    %43 = arith.andi %40, %42 : vector<27x256xi1>
    %cst_16 = arith.constant 1.000000e+01 : f32
    %44 = vector.broadcast %cst_16 : f32 to vector<27x256xf32>
    %45 = arith.select %43, %44, %38 : vector<27x256xi1>, vector<27x256xf32>
    %cst_17 = arith.constant 3.000000e+00 : f32
    %46 = vector.broadcast %cst_17 : f32 to vector<27x256xf32>
    %47 = arith.cmpf oeq, %16, %46 : vector<27x256xf32>
    %48 = arith.andi %40, %47 : vector<27x256xi1>
    %cst_18 = arith.constant 1.300000e+01 : f32
    %49 = vector.broadcast %cst_18 : f32 to vector<27x256xf32>
    %50 = arith.select %48, %49, %45 : vector<27x256xi1>, vector<27x256xf32>
    %cst_19 = arith.constant 1.000000e+00 : f32
    %51 = vector.broadcast %cst_19 : f32 to vector<27x256xf32>
    %52 = arith.cmpf oeq, %13, %51 : vector<27x256xf32>
    %cst_20 = arith.constant 2.000000e+00 : f32
    %53 = vector.broadcast %cst_20 : f32 to vector<27x256xf32>
    %54 = arith.cmpf oeq, %16, %53 : vector<27x256xf32>
    %55 = arith.andi %52, %54 : vector<27x256xi1>
    %cst_21 = arith.constant 1.600000e+01 : f32
    %56 = vector.broadcast %cst_21 : f32 to vector<27x256xf32>
    %57 = arith.select %55, %56, %50 : vector<27x256xi1>, vector<27x256xf32>
    %cst_22 = arith.constant 3.000000e+00 : f32
    %58 = vector.broadcast %cst_22 : f32 to vector<27x256xf32>
    %59 = arith.cmpf oeq, %16, %58 : vector<27x256xf32>
    %60 = arith.andi %52, %59 : vector<27x256xi1>
    %cst_23 = arith.constant 3.000000e+01 : f32
    %61 = vector.broadcast %cst_23 : f32 to vector<27x256xf32>
    %62 = arith.select %60, %61, %57 : vector<27x256xi1>, vector<27x256xf32>
    %cst_24 = arith.constant 2.000000e+00 : f32
    %63 = vector.broadcast %cst_24 : f32 to vector<27x256xf32>
    %64 = arith.cmpf oeq, %13, %63 : vector<27x256xf32>
    %cst_25 = arith.constant 2.000000e+00 : f32
    %65 = vector.broadcast %cst_25 : f32 to vector<27x256xf32>
    %66 = arith.cmpf oeq, %16, %65 : vector<27x256xf32>
    %67 = arith.andi %64, %66 : vector<27x256xi1>
    %cst_26 = arith.constant 3.300000e+01 : f32
    %68 = vector.broadcast %cst_26 : f32 to vector<27x256xf32>
    %69 = arith.select %67, %68, %62 : vector<27x256xi1>, vector<27x256xf32>
    %cst_27 = arith.constant 3.000000e+00 : f32
    %70 = vector.broadcast %cst_27 : f32 to vector<27x256xf32>
    %71 = arith.cmpf oeq, %16, %70 : vector<27x256xf32>
    %72 = arith.andi %64, %71 : vector<27x256xi1>
    %cst_28 = arith.constant 2.300000e+01 : f32
    %73 = vector.broadcast %cst_28 : f32 to vector<27x256xf32>
    %74 = arith.select %72, %73, %69 : vector<27x256xi1>, vector<27x256xf32>
    %cst_29 = arith.constant 2.000000e+00 : f32
    %75 = vector.broadcast %cst_29 : f32 to vector<27x256xf32>
    %76 = arith.cmpf oeq, %16, %75 : vector<27x256xf32>
    %cst_30 = arith.constant 3.000000e+00 : f32
    %77 = vector.broadcast %cst_30 : f32 to vector<27x256xf32>
    %78 = arith.cmpf oeq, %16, %77 : vector<27x256xf32>
    %79 = arith.ori %76, %78 : vector<27x256xi1>
    %cst_31 = arith.constant 0.000000e+00 : f32
    %80 = vector.broadcast %cst_31 : f32 to vector<1x27x256xf32>
    %81 = arith.subf %80, %0 : vector<1x27x256xf32>
    %82 = vector.shape_cast %79 : vector<27x256xi1> to vector<1x27x256xi1>
    %83 = arith.select %82, %0, %81 : vector<1x27x256xi1>, vector<1x27x256xf32>
    %84 = math.exp %83 : vector<1x27x256xf32>
    %cst_32 = arith.constant 1.000000e+00 : f32
    %85 = vector.broadcast %cst_32 : f32 to vector<1x27x256xf32>
    %86 = arith.addf %85, %84 : vector<1x27x256xf32>
    %cst_33 = arith.constant 1.000000e+00 : f32
    %87 = vector.broadcast %cst_33 : f32 to vector<1x27x256xf32>
    %88 = arith.divf %87, %86 : vector<1x27x256xf32>
    %89 = vector.shape_cast %33 : vector<27x256xf32> to vector<1x27x256xf32>
    %90 = arith.addf %88, %89 : vector<1x27x256xf32>
    %91 = vector.shape_cast %79 : vector<27x256xi1> to vector<1x27x256xi1>
    %92 = arith.select %91, %84, %90 : vector<1x27x256xi1>, vector<1x27x256xf32>
    %93 = vector.shape_cast %74 : vector<27x256xf32> to vector<1x27x256xf32>
    %94 = arith.mulf %92, %93 : vector<1x27x256xf32>
    %c0_34 = arith.constant 0 : index
    %c0_35 = arith.constant 0 : index
    %c0_36 = arith.constant 0 : index
    %95 = vector.load %arg3[%c0_34, %c0_35, %c0_36] : memref<1x27x256xf32, #tpu.memory_space<vmem>>, vector<1x27x256xf32>
    tpu.vector_store %arg3[%c0_34, %c0_35, %c0_36], %94 {strides = array<i32>} : memref<1x27x256xf32, #tpu.memory_space<vmem>>, vector<1x27x256xf32>,
    return
  }
  func.func @transform_0(%arg0: i32, %arg1: i32) -> (i32, i32, i32) {
    %c0_i32 = arith.constant 0 : i32
    %c0_i32_0 = arith.constant 0 : i32
    return %arg0, %c0_i32, %arg1 : i32, i32, i32
  }
  func.func @transform_1(%arg0: i32, %arg1: i32) -> (i32, i32, i32) {
    %c0_i32 = arith.constant 0 : i32
    %c0_i32_0 = arith.constant 0 : i32
    return %arg0, %c0_i32, %arg1 : i32, i32, i32
  }
}

</mosaic_0001>

<bundles_post_ra>
// kernel: yolo_layer_forward.1
= control target key start
LH: loop header
LB: loop body
LE: loop exit
PB: predicated region body
PF: predicated region fallthrough
CT: control target
= control target key end

     0   :  { %s607_s6 = smov 0   ;;  %s609_s7 = smov 0   ;;  %s1073_s0 = inlined_call_operand.vmem [shape: f32[2,27,256], index: 0, kind: input, shape index: {}]   ;;  %s1074_s1 = inlined_call_operand.vmem [shape: f32[2,27,256], index: 1, kind: output, shape index: {}]  }
   0x1   :  { %s611_s8 = smov 0  }
   0x2 LB: > { %s23_s9 = sadd.s32 1, %s590_s7  ;;  %p506_p0 = scmp.ge.s32.totalorder %s594_s8, 1  ;;  %s594_s8 = sphi %s611_s8, %s11_s8   ;;  %s590_s7 = sphi %s609_s7, %s1130_s7   ;;  %s586_s6 = sphi %s607_s6, %s1129_s6  }
   0x3   : > { %p25_p1 = scmp.ge.s32.totalorder %s23_s9, 2  ;;  %p108_p2 = scmp.lt.s32.totalorder %s594_s8, 3 }
   0x5   : > { %s1132_s9 = smov (%p25_p1, %s23_s9), 0  ;;  %p109_p3 = pnand %p506_p0, %p108_p2 }
   0x6   : > { %v164_v0 = vlaneseq (!%p109_p3)  ;;  %p137_p4 = scmp.lt.s32.totalorder (!%p109_p3), %s586_s6, 1  ;;  %v596_v55 = vmov (!%p109_p3), 1.0  }
   0x7   : > { %112 = sbr.rel (%p109_p3) target bundleno = 78 (0x4e), region = 24 }
   0x8   : > { %v165_v1 = vshrl.u32 (!%p109_p3), %v164_v0, 7  ;;  %v627_v9 = vand.u32 (!%p109_p3), 127, %v164_v0 }
   0xa   : > { %v169_v2 = vcvt.s32.f32 (!%p109_p3), %v165_v1  ;;  %v166_v3 = vadd.s32 (!%p109_p3), 8, %v165_v1  ;;  %v167_v6 = vadd.s32 (!%p109_p3), 16, %v165_v1  ;;  %v634_v14 = vadd.s32 (!%p109_p3), 128, %v627_v9 }
   0xb   : > { %v176_v16 = vcvt.s32.f32 (!%p109_p3), %v627_v9  ;;  %v651_v22 = vadd.s32 (!%p109_p3), 24, %v165_v1 }
   0xc   : > { %v183_v4 = vadd.f32 (!%p109_p3), 0.5, %v169_v2  ;;  %v170_v5 = vcvt.s32.f32 (!%p109_p3), %v166_v3  ;;  %v171_v11 = vcvt.s32.f32 (!%p109_p3), %v167_v6  ;;  %v177_v21 = vcvt.s32.f32 (!%p109_p3), %v634_v14 }
   0xd   : > { %v204_v24 = vadd.f32 (!%p109_p3), 0.5, %v176_v16  ;;  %v172_v29 = vcvt.s32.f32 (!%p109_p3), %v651_v22 }
   0xe   : > { %s1134_s6 = smov (!%p137_p4, %s586_s6), 1  ;;  %v188_v7 = vmul.f32 0.11111111, %v183_v4  ;;  %v184_v8 = vadd.f32 0.5, %v170_v5  ;;  %v185_v15 = vadd.f32 0.5, %v171_v11  ;;  %v205_v28 = vadd.f32 0.5, %v177_v21 }
   0xf   : > { %s513_s10 = sshll.u32 %s1134_s6, 6  ;;  %v207_v34 = vmul.f32 0.0625, %v204_v24  ;;  %v186_v41 = vadd.f32 0.5, %v172_v29 }
  0x10   : > { %v629_v10 = vfloor.f32 %v188_v7  ;;  %v189_v12 = vmul.f32 0.11111111, %v184_v8  ;;  %s641_s13 = scalar_lea.vmem %s1073_s0, %s513_s10  ;;  %v190_v23 = vmul.f32 0.11111111, %v185_v15  ;;  %v208_v40 = vmul.f32 0.0625, %v205_v28  ;;  %s929_s16 = scalar_lea.vmem %s1074_s1, %s513_s10 }
  0x11   : > { %v156_v19 = vld [vmem:[%s641_s13] sm:$0xff]  ;;  %v157_v20 = vld [vmem:[%s641_s13 + $0x8] sm:$0xff]  ;;  %v158_v32 = vld [vmem:[%s641_s13 + $0x10] sm:$0xff]  ;;  %v684_v45 = vfloor.f32 %v207_v34  ;;  %v191_v47 = vmul.f32 0.11111111, %v186_v41 }
  0x12   : > { %v196_v13 = vmul.f32 9.0, %v629_v10  ;;  %v644_v17 = vfloor.f32 %v189_v12  ;;  %v327_v26 = vsub.f32 0.0, %v156_v19  ;;  %v328_v27 = vsub.f32 0.0, %v157_v20  ;;  %v159_v37 = vld [vmem:[%s641_s13 + $0x18] sm:$0xff]  ;;  %v160_v49 = vld [vmem:[%s641_s13 + $0x20] sm:$0xff]  ;;  %v161_v53 = vld [vmem:[%s641_s13 + $0x28] sm:$0xff] }
  0x13   : > { %v661_v30 = vfloor.f32 %v190_v23  ;;  %v329_v42 = vsub.f32 0.0, %v158_v32  ;;  %v330_v44 = vsub.f32 0.0, %v159_v37  ;;  %vm255_vm6 = vcmp.eq.f32.partialorder %v629_v10, 0.0  ;;  %v163_v6 = vld [vmem:[%s641_s13 + $0x38] sm:$0x7] }
  0x14   : > { %v646_v18 = vsub.f32 %v169_v2, %v196_v13  ;;  %v197_v25 = vmul.f32 9.0, %v644_v17  ;;  %v688_v46 = vfloor.f32 %v208_v40  ;;  %v211_v54 = vmul.f32 16.0, %v684_v45  ;;  %v735_v2 = vld [vmem:[%s641_s13 + $0x30] sm:$0x7] }
  0x15   : > { %v198_v43 = vmul.f32 9.0, %v661_v30  ;;  %v331_v61 = vsub.f32 0.0, %v160_v49  ;;  %v717_v62 = vfloor.f32 %v191_v47  ;;  %v332_v63 = vsub.f32 0.0, %v161_v53 }
  0x16   : > { %vm259_vm0 = vcmp.eq.f32.partialorder %v646_v18, 2.0  ;;  %vm271_vm1 = vcmp.eq.f32.partialorder %v646_v18, 3.0  ;;  %v672_v33 = vsub.f32 %v170_v5, %v197_v25  ;;  %vm247_vm5 = vcmp.lt.f32.partialorder %v646_v18, 2.0 }
  0x17   : > { %vm667_vm2 = vmor %vm259_vm0, %vm271_vm1  ;;  %v699_v50 = vsub.f32 %v171_v11, %v198_v43  ;;  %v251_v56 = vsel %vm247_vm5, 26.0, %v596_v55  ;;  %v212_v60 = vmul.f32 16.0, %v688_v46  ;;  %vm283_vm12 = vcmp.eq.f32.partialorder %v629_v10, 1.0 }
  0x18   : > { %v335_v35 = vsel %vm667_vm2, %v156_v19, %v327_v26  ;;  %v336_v36 = vsel %vm667_vm2, %v157_v20, %v328_v27  ;;  %vm1077_vm3 = vcmp.eq.f32.partialorder %v672_v33, 2.0  ;;  %vm272_vm4 = vcmp.eq.f32.partialorder %v672_v33, 3.0  ;;  %vm712_vm8 = vmand %vm255_vm6, %vm259_vm0 }
  0x19   : > { %v343_v38 = vmul.f32 1.442695, %v335_v35  ;;  %v345_v39 = vmul.f32 1.442695, %v336_v36  ;;  %vm694_vm7 = vmor %vm1077_vm3, %vm272_vm4  ;;  %vm1076_vm9 = vcmp.eq.f32.partialorder %v699_v50, 2.0  ;;  %vm1075_vm10 = vcmp.eq.f32.partialorder %v699_v50, 3.0 }
  0x1a   : > { %v337_v51 = vsel %vm694_vm7, %v158_v32, %v329_v42  ;;  %v338_v52 = vsel %vm694_vm7, %v159_v37, %v330_v44  ;;  %v267_v0 = vsel %vm712_vm8, 10.0, %v251_v56  ;;  %vm275_vm11 = vmand %vm255_vm6, %vm271_vm1  ;;  %v730_v1 = vsub.f32 %v176_v16, %v211_v54 }
  0x1b   : > { %540 = vpow2.f32 %v343_v38  ;;  %v347_v58 = vmul.f32 1.442695, %v337_v51  ;;  %v349_v59 = vmul.f32 1.442695, %v338_v52  ;;  %vm248_vm13 = vcmp.lt.f32.partialorder %v672_v33, 2.0  ;;  %vm749_vm6 = vmor %vm1076_vm9, %vm1075_vm10 }
  0x1c   : > { %542 = vpow2.f32 %v345_v39  ;;  %vm256_vm14 = vcmp.eq.f32.partialorder %v644_v17, 0.0  ;;  %vm215_vm15 = vcmp.eq.f32.partialorder %v646_v18, 0.0  ;;  %vm227_vm5 = vcmp.eq.f32.partialorder %v646_v18, 1.0  ;;  %vm761_vm8 = vmand %vm283_vm12, %vm259_vm0 }
  0x1d   : > { %544 = vpow2.f32 %v347_v58  ;;  %v743_v4 = vsub.f32 %v177_v21, %v212_v60  ;;  %v199_v7 = vmul.f32 9.0, %v717_v62  ;;  %v279_v9 = vsel %vm275_vm11, 13.0, %v267_v0  ;;  %vm778_vm11 = vmand %vm256_vm14, %vm1077_vm3 }
  0x1e   : > { %546 = vpow2.f32 %v349_v59  ;;  %v339_v13 = vsel %vm749_vm6, %v160_v49, %v331_v61  ;;  %v340_v14 = vsel %vm749_vm6, %v161_v53, %v332_v63  ;;  %v252_v16 = vsel %vm248_vm13, 26.0, %v596_v55  ;;  %vm295_vm13 = vmand %vm283_vm12, %vm271_vm1 }
  0x1f   : > { %v351_v20 = vmul.f32 1.442695, %v339_v13  ;;  %v353_v21 = vmul.f32 1.442695, %v340_v14  ;;  %vm303_vm10 = vcmp.eq.f32.partialorder %v629_v10, 2.0  ;;  %v333_v23 = vsub.f32 0.0, %v735_v2  ;;  %vm276_vm12 = vmand %vm256_vm14, %vm272_vm4 }
  0x20   : > { %v334_v24 = vsub.f32 0.0, %v163_v6  ;;  %v291_v25 = vsel %vm761_vm8, 16.0, %v279_v9  ;;  %vm284_vm9 = vcmp.eq.f32.partialorder %v644_v17, 1.0  ;;  %v793_v26 = vsub.f32 %v172_v29, %v199_v7  ;;  %vm811_vm8 = vmand %vm303_vm10, %vm259_vm0 }
  0x21   : > { %v219_v27 = vsel %vm215_vm15, %v730_v1, 0.0  ;;  %v231_v28 = vsel %vm227_vm5, %v684_v45, 0.0  ;;  %v268_v32 = vsel %vm778_vm11, 10.0, %v252_v16  ;;  %v220_v29 = vsel %vm215_vm15, %v743_v4, 0.0  ;;  %vm828_vm0 = vmand %vm303_vm10, %vm271_vm1 }
  0x22   : > { %v232_v34 = vsel %vm227_vm5, %v688_v46, 0.0  ;;  %vm257_vm11 = vcmp.eq.f32.partialorder %v661_v30, 0.0  ;;  %v299_v36 = vsel %vm295_vm13, 30.0, %v291_v25  ;;  %vm216_vm14 = vcmp.eq.f32.partialorder %v672_v33, 0.0  ;;  %vm841_vm13 = vmand %vm284_vm9, %vm1077_vm3 }
  0x23   : > { %vm228_vm15 = vcmp.eq.f32.partialorder %v672_v33, 1.0  ;;  %vm249_vm5 = vcmp.lt.f32.partialorder %v699_v50, 2.0  ;;  %v280_v39 = vsel %vm276_vm12, 13.0, %v268_v32  ;;  %v239_v40 = vadd.f32 %v231_v28, %v219_v27  ;;  %vm852_vm12 = vmand %vm284_vm9, %vm272_vm4 }
  0x24   : > { %vm304_vm3 = vcmp.eq.f32.partialorder %v644_v17, 2.0  ;;  %v311_v43 = vsel %vm811_vm8, 33.0, %v299_v36  ;;  %v240_v44 = vadd.f32 %v232_v34, %v220_v29  ;;  %v253_v47 = vsel %vm249_vm5, 26.0, %v596_v55 }
  0x25   : > { %v737_v3 = vpop.eup %540  ;;  %vm1098_vm1 = vcmp.eq.f32.partialorder %v699_v50, 2.0  ;;  %v221_v51 = vsel %vm216_vm14, %v730_v1, 0.0  ;;  %v233_v52 = vsel %vm228_vm15, %v684_v45, 0.0  ;;  %v292_v53 = vsel %vm841_vm13, 16.0, %v280_v39 }
  0x26   : > { %v755_v8 = vpop.eup %542  ;;  %v359_v12 = vadd.f32 1.0, %v737_v3  ;;  %vm865_vm10 = vmand %vm257_vm11, %vm1098_vm1  ;;  %vm1101_vm9 = vcmp.eq.f32.partialorder %v793_v26, 3.0  ;;  %vm1102_vm8 = vcmp.eq.f32.partialorder %v793_v26, 2.0  ;;  %v222_v56 = vsel %vm216_vm14, %v743_v4, 0.0 }
  0x27   : > { %v360_v15 = vadd.f32 1.0, %v755_v8  ;;  %v822_v35 = vpop.eup %544  ;;  %vm881_vm5 = vmor %vm1102_vm8, %vm1101_vm9  ;;  %v234_v57 = vsel %vm228_vm15, %v688_v46, 0.0  ;;  %v269_v61 = vsel %vm865_vm10, 10.0, %v253_v47  ;;  %vm1105_vm13 = vcmp.eq.f32.partialorder %v699_v50, 3.0 }
  0x28   : > { %548 = vrcp.f32 %v359_v12  ;;  %v835_v38 = vpop.eup %546  ;;  %v361_v10 = vadd.f32 1.0, %v822_v35  ;;  %v341_v58 = vsel %vm881_vm5, %v735_v2, %v333_v23  ;;  %v342_v59 = vsel %vm881_vm5, %v163_v6, %v334_v24  ;;  %vm902_vm14 = vmand %vm257_vm11, %vm1105_vm13 }
  0x29   : > { %550 = vrcp.f32 %v360_v15  ;;  %v362_v42 = vadd.f32 1.0, %v835_v38  ;;  %vm285_vm15 = vcmp.eq.f32.partialorder %v661_v30, 1.0  ;;  %v355_v0 = vmul.f32 1.442695, %v341_v58  ;;  %vm316_vm9 = vmand %vm304_vm3, %vm272_vm4 }
  0x2a   : > { %552 = vpow2.f32 %v351_v20  ;;  %v357_v2 = vmul.f32 1.442695, %v342_v59  ;;  %v319_v6 = vsel %vm828_vm0, 23.0, %v311_v43  ;;  %v241_v11 = vadd.f32 %v233_v52, %v221_v51 }
  0x2b   : > { %554 = vpow2.f32 %v353_v21  ;;  %v300_v12 = vsel %vm852_vm12, 30.0, %v292_v53  ;;  %vm1108_vm1 = vcmp.eq.f32.partialorder %v672_v33, 2.0  ;;  %v242_v16 = vadd.f32 %v234_v57, %v222_v56 }
  0x2c   : > { %556 = vrcp.f32 %v361_v10  ;;  %vm915_vm11 = vmand %vm304_vm3, %vm1108_vm1  ;;  %vm305_vm10 = vcmp.eq.f32.partialorder %v661_v30, 2.0  ;;  %v281_v21 = vsel %vm902_vm14, 13.0, %v269_v61  ;;  %vm1111_vm0 = vcmp.eq.f32.partialorder %v699_v50, 2.0 }
  0x2d   : > { %558 = vrcp.f32 %v362_v42  ;;  %vm940_vm12 = vmand %vm285_vm15, %vm1111_vm0  ;;  %v312_v27 = vsel %vm915_vm11, 33.0, %v300_v12  ;;  %vm250_vm8 = vcmp.lt.f32.partialorder %v793_v26, 2.0  ;;  %vm258_vm13 = vcmp.eq.f32.partialorder %v717_v62, 0.0 }
  0x2e   : > { %560 = vpow2.f32 %v355_v0  ;;  %vm217_vm14 = vcmp.eq.f32.partialorder %v699_v50, 0.0  ;;  %v293_v31 = vsel %vm940_vm12, 16.0, %v281_v21  ;;  %vm1114_vm1 = vcmp.eq.f32.partialorder %v699_v50, 3.0 }
  0x2f   : > { %562 = vpow2.f32 %v357_v2  ;;  %vm297_vm11 = vmand %vm285_vm15, %vm1114_vm1  ;;  %v254_v29 = vsel %vm250_vm8, 26.0, %v596_v55  ;;  %vm1115_vm3 = vcmp.eq.f32.partialorder %v793_v26, 2.0  ;;  %v223_v37 = vsel %vm217_vm14, %v730_v1, 0.0 }
  0x30   : > { %vm972_vm4 = vmand %vm258_vm13, %vm1115_vm3  ;;  %v301_v18 = vsel %vm297_vm11, 30.0, %v293_v31  ;;  %vm1121_vm12 = vcmp.eq.f32.partialorder %v793_v26, 3.0  ;;  %vm286_vm8 = vcmp.eq.f32.partialorder %v717_v62, 1.0 }
  0x31   : > { %vm1118_vm15 = vmmov %vm1111_vm0 }
  0x32   : > { %v549_v60 = vpop.eup %548  ;;  %vm986_vm0 = vmand %vm305_vm10, %vm1118_vm15 }
  0x33   : > { %v551_v7 = vpop.eup %550  ;;  %v383_v9 = vadd.f32 %v549_v60, %v239_v40  ;;  %v224_v40 = vsel %vm217_vm14, %v743_v4, 0.0  ;;  %v313_v51 = vsel %vm986_vm0, 33.0, %v301_v18  ;;  %vm1122_vm14 = vmmov %vm1114_vm1  ;;  %vm230_vm1 = vcmp.eq.f32.partialorder %v793_v26, 1.0 }
  0x34   : > { %v919_v14 = vpop.eup %552  ;;  %v384_v15 = vadd.f32 %v551_v7, %v240_v44  ;;  %v270_v44 = vsel %vm972_vm4, 10.0, %v254_v29  ;;  %vm1126_vm11 = vmmov %vm1121_vm12  ;;  %vm306_vm4 = vcmp.eq.f32.partialorder %v717_v62, 2.0  ;;  %v238_v5 = vsel %vm230_vm1, %v688_v46, 0.0 }
  0x35   : > { %v922_v19 = vpop.eup %554  ;;  %v391_v20 = vsel %vm667_vm2, %v737_v3, %v383_v9  ;;  %v363_v24 = vadd.f32 1.0, %v919_v14 }
  0x36   : > { %v399_v25 = vmul.f32 %v391_v20, %v319_v6  ;;  %v392_v3 = vsel %vm667_vm2, %v755_v8, %v384_v15  ;;  %v364_v28 = vadd.f32 1.0, %v922_v19  ;;  %vm229_vm2 = vcmp.eq.f32.partialorder %v699_v50, 1.0  ;;  %v557_v17 = vpop.eup %556 }
  0x37   : > { %v400_v32 = vmul.f32 %v392_v3, %v319_v6  ;;  %564 = vrcp.f32 %v363_v24  ;;  %v559_v33 = vpop.eup %558  ;;  %v320_v8 = vsel %vm316_vm9, 23.0, %v312_v27  ;;  %v385_v22 = vadd.f32 %v557_v17, %v241_v11  ;;  %vm278_vm9 = vmand %vm258_vm13, %vm1121_vm12 }
  0x38   : > { %407 = vst [vmem:[%s929_s16] sm:$0xff] %v399_v25  ;;  %566 = vrcp.f32 %v364_v28  ;;  %v386_v36 = vadd.f32 %v559_v33, %v242_v16  ;;  %v235_v39 = vsel %vm229_vm2, %v684_v45, 0.0  ;;  %v236_v41 = vsel %vm229_vm2, %v688_v46, 0.0  ;;  %vm1123_vm13 = vmmov %vm1115_vm3 }
  0x39   : > { %408 = vst [vmem:[%s929_s16 + $0x8] sm:$0xff] %v400_v32  ;;  %v393_v10 = vsel %vm694_vm7, %v822_v35, %v385_v22  ;;  %v561_v35 = vpop.eup %560  ;;  %v243_v49 = vadd.f32 %v235_v39, %v223_v37  ;;  %v282_v53 = vsel %vm278_vm9, 13.0, %v270_v44  ;;  %vm1021_vm2 = vmand %vm286_vm8, %vm1123_vm13  ;;  %v237_v6 = vsel %vm230_vm1, %v684_v45, 0.0 }
  0x3a   : > { %v401_v42 = vmul.f32 %v393_v10, %v320_v8  ;;  %v394_v43 = vsel %vm694_vm7, %v835_v38, %v386_v36  ;;  %vm317_vm7 = vmand %vm305_vm10, %vm1122_vm14  ;;  %v563_v48 = vpop.eup %562  ;;  %v244_v38 = vadd.f32 %v236_v41, %v224_v40  ;;  %v365_v52 = vadd.f32 1.0, %v561_v35 }
  0x3b   : > { %v402_v47 = vmul.f32 %v394_v43, %v320_v8  ;;  %v366_v57 = vadd.f32 1.0, %v563_v48  ;;  %v321_v50 = vsel %vm317_vm7, 23.0, %v313_v51  ;;  %vm218_vm10 = vcmp.eq.f32.partialorder %v793_v26, 0.0  ;;  %vm298_vm3 = vmand %vm286_vm8, %vm1126_vm11 }
  0x3c   : > { %409 = vst [vmem:[%s929_s16 + $0x10] sm:$0xff] %v401_v42  ;;  %568 = vrcp.f32 %v365_v52  ;;  %v294_v61 = vsel %vm1021_vm2, 16.0, %v282_v53  ;;  %v225_v7 = vsel %vm218_vm10, %v730_v1, 0.0  ;;  %vm1127_vm15 = vmmov %vm1123_vm13  ;;  %v226_v12 = vsel %vm218_vm10, %v743_v4, 0.0 }
  0x3d   : > { %410 = vst [vmem:[%s929_s16 + $0x18] sm:$0xff] %v402_v47  ;;  %570 = vrcp.f32 %v366_v57  ;;  %v302_v11 = vsel %vm298_vm3, 30.0, %v294_v61  ;;  %vm310_vm0 = vmand %vm306_vm4, %vm1127_vm15  ;;  %v245_v1 = vadd.f32 %v237_v6, %v225_v7  ;;  %v246_v45 = vadd.f32 %v238_v5, %v226_v12 }
  0x3e   : > { %v314_v13 = vsel %vm310_vm0, 33.0, %v302_v11 }
  0x41   : > { %v565_v58 = vpop.eup %564 }
  0x42   : > { %v567_v30 = vpop.eup %566  ;;  %v387_v59 = vadd.f32 %v565_v58, %v243_v49 }
  0x43   : > { %v388_v60 = vadd.f32 %v567_v30, %v244_v38 }
  0x44   : > { %v395_v63 = vsel %vm749_vm6, %v919_v14, %v387_v59 }
  0x45   : > { %v403_v0 = vmul.f32 %v395_v63, %v321_v50  ;;  %v396_v2 = vsel %vm749_vm6, %v922_v19, %v388_v60  ;;  %vm1128_vm6 = vmmov %vm1126_vm11 }
  0x46   : > { %v404_v9 = vmul.f32 %v396_v2, %v321_v50  ;;  %vm318_vm12 = vmand %vm306_vm4, %vm1128_vm6  ;;  %v569_v14 = vpop.eup %568 }
  0x47   : > { %411 = vst [vmem:[%s929_s16 + $0x20] sm:$0xff] %v403_v0  ;;  %v571_v15 = vpop.eup %570  ;;  %v322_v16 = vsel %vm318_vm12, 23.0, %v314_v13  ;;  %v389_v19 = vadd.f32 %v569_v14, %v245_v1 }
  0x48   : > { %412 = vst [vmem:[%s929_s16 + $0x28] sm:$0xff] %v404_v9  ;;  %v390_v20 = vadd.f32 %v571_v15, %v246_v45 }
  0x49   : > { %v397_v46 = vsel %vm881_vm5, %v561_v35, %v389_v19 }
  0x4a   : > { %v405_v4 = vmul.f32 %v397_v46, %v322_v16  ;;  %v398_v21 = vsel %vm881_vm5, %v563_v48, %v390_v20 }
  0x4b   : > { %v406_v23 = vmul.f32 %v398_v21, %v322_v16 }
  0x4c   : > { %413 = vst [vmem:[%s929_s16 + $0x30] sm:$0x7] %v405_v4 }
  0x4d   : > { %414 = vst [vmem:[%s929_s16 + $0x38] sm:$0x7] %v406_v23 }
  0x4e PF: > { %s11_s8 = sadd.s32 1, %s594_s8   ;;  %s1129_s6 = smov %s590_s7 }
  0x4f   : > { %p8_p5 = scmp.ge.s32.totalorder %s11_s8, 4   ;;  %s1130_s7 = smov %s1132_s9 }
  0x51   :  { %10 = sbr.rel (!%p8_p5) target bundleno = 2 (0x2), region = 54 }

</bundles_post_ra>
